<compile_context>
chip_gen: v7x
topology: tpu7x:2x2x1
jax: 0.10.0
libtpu: 0.0.40
codegen_flags: <defaults>
</compile_context>

<pallas_src>
import functools

import jax
import jax.numpy as jnp
from jax.experimental import pallas as pl
from jax.experimental.pallas import tpu as pltpu

_SUBLANE = 8
_LANE = 128
_MAX_TILE_B = 8192   # keeps per-step VMEM (~3 KiB * tile_b) well under 32 MiB
_MIN_SPLIT = 1024    # split batches >= 2*_MIN_SPLIT into >=2 grid steps (v7x)


def _round_up(x, m):
    return ((x + m - 1) // m) * m


def _mlp_kernel(x_ref, w1_ref, b1_ref, w2_ref, b2_ref, out_ref):
    # fc1 (MXU) + bias + ReLU (VPU filler under the MXU/DMA shadow)
    x = x_ref[...].astype(w1_ref.dtype)
    h = jnp.dot(x, w1_ref[...], preferred_element_type=jnp.float32)
    h = jnp.maximum(h + b1_ref[...], 0.0)
    # fc2 (MXU) + bias; narrow (nb_action) output written directly
    q = jnp.dot(h.astype(w2_ref.dtype), w2_ref[...],
                preferred_element_type=jnp.float32)
    out_ref[...] = (q + b2_ref[...]).astype(out_ref.dtype)


def _pad_params(w1, b1, w2, b2, compute_dtype):
    """Pad only the hidden dim (30 -> 128 lanes). Padded entries are zero so
    ReLU(0*x + 0) = 0 and zero rows of w2 contribute nothing -> exact results.
    Weights are stored TRANSPOSED vs PyTorch, i.e. (in_features, out_features).
    """
    f, h = w1.shape
    _, a = w2.shape
    h_pad = _round_up(h, _LANE)
    w1_p = jnp.zeros((f, h_pad), compute_dtype).at[:, :h].set(
        w1.astype(compute_dtype))
    b1_p = jnp.zeros((1, h_pad), jnp.float32).at[:, :h].set(
        b1.reshape(1, h).astype(jnp.float32))
    w2_p = jnp.zeros((h_pad, a), compute_dtype).at[:h, :].set(
        w2.astype(compute_dtype))
    b2_p = b2.reshape(1, a).astype(jnp.float32)
    return w1_p, b1_p, w2_p, b2_p


@functools.partial(jax.jit, static_argnames=("tile_b", "compute_dtype"))
def network_forward(state, w1, b1, w2, b2, *, tile_b=4096,
                    compute_dtype=jnp.float32):
    """state: (B, input_size) f32; returns q_values: (B, nb_action) f32."""
    B, F = state.shape
    A = w2.shape[1]

    w1_p, b1_p, w2_p, b2_p = _pad_params(w1, b1, w2, b2, compute_dtype)
    H_pad = w1_p.shape[1]

    # Batch padded only to a multiple of 8 (sublane), never to tile_b.
    B_pad = _round_up(B, _SUBLANE)
    if B_pad != B:
        state_in = jnp.zeros((B_pad, F), state.dtype).at[:B, :].set(state)
    else:
        state_in = state

    # Tile selection: multiple of 8, capped for VMEM, and >=2 grid steps for
    # large batches so v7x megacore shards the batch across both TCs.
    tile_b = max(_SUBLANE, min(_round_up(tile_b, _SUBLANE), _MAX_TILE_B))
    tile_b_eff = min(tile_b, B_pad)
    if B_pad >= 2 * _MIN_SPLIT:
        tile_b_eff = min(tile_b_eff, _round_up(pl.cdiv(B_pad, 2), _SUBLANE))

    grid = (pl.cdiv(B_pad, tile_b_eff),)  # last block may be partial (OK)

    out = pl.pallas_call(
        _mlp_kernel,
        out_shape=jax.ShapeDtypeStruct((B_pad, A), jnp.float32),
        grid_spec=pltpu.PrefetchScalarGridSpec(
            num_scalar_prefetch=0,
            grid=grid,
            in_specs=[
                # batch-tiled state stream (feature dim = full array dim)
                pl.BlockSpec((tile_b_eff, F), lambda i: (i, 0)),
                # weights/biases: constant index_map -> resident in VMEM
                pl.BlockSpec((F, H_pad), lambda i: (0, 0)),
                pl.BlockSpec((1, H_pad), lambda i: (0, 0)),
                pl.BlockSpec((H_pad, A), lambda i: (0, 0)),
                pl.BlockSpec((1, A), lambda i: (0, 0)),
            ],
            out_specs=pl.BlockSpec((tile_b_eff, A), lambda i: (i, 0)),
        ),
        compiler_params=pltpu.CompilerParams(
            dimension_semantics=("parallel",),       # megacore shard on v7x
            vmem_limit_bytes=32 * 1024 * 1024),
    )(state_in, w1_p, b1_p, w2_p, b2_p)

    return out if B_pad == B else out[:B]


@jax.jit
def network_forward_xla(state, w1, b1, w2, b2):
    """Plain fused-XLA path (reference, and faster for tiny per-step batches)."""
    return jnp.maximum(state @ w1 + b1, 0.0) @ w2 + b2


def network_apply(state, w1, b1, w2, b2, *, min_pallas_batch=1024, **kw):
    """Dispatch: fused XLA for small RL action-selection batches, Pallas kernel
    for large replay/inference batches (crossover is well above 64 for a
    5->30->3 MLP; benchmark per generation)."""
    if state.shape[0] < min_pallas_batch:
        return network_forward_xla(state, w1, b1, w2, b2)
    return network_forward(state, w1, b1, w2, b2, **kw)


def init_params(key, input_size, nb_action, nb_hidden=30):
    """Mimics PyTorch's default Linear init (U(-1/sqrt(fan_in), 1/sqrt(fan_in))).
    Weights stored (in_features, out_features)."""
    k1, k2, k3, k4 = jax.random.split(key, 4)
    bound1 = 1.0 / jnp.sqrt(jnp.float32(input_size))
    bound2 = 1.0 / jnp.sqrt(jnp.float32(nb_hidden))
    w1 = jax.random.uniform(k1, (input_size, nb_hidden), jnp.float32, -bound1, bound1)
    b1 = jax.random.uniform(k2, (1, nb_hidden), jnp.float32, -bound1, bound1)
    w2 = jax.random.uniform(k3, (nb_hidden, nb_action), jnp.float32, -bound2, bound2)
    b2 = jax.random.uniform(k4, (1, nb_action), jnp.float32, -bound2, bound2)
    return w1, b1, w2, b2


if __name__ == "__main__":
    input_size = 5   # e.g. 3 sensor signals + orientation + -orientation
    nb_action = 3

    key = jax.random.PRNGKey(0)
    k_params, k_s1, k_s2 = jax.random.split(key, 3)
    w1, b1, w2, b2 = init_params(k_params, input_size, nb_action)

    # 1) tiny batch (B=2): single grid step; padded batch rows are dropped.
    state_small = jax.random.normal(k_s1, (2, input_size), jnp.float32)
    q_small = jax.block_until_ready(
        network_forward(state_small, w1, b1, w2, b2))
    ref_small = jax.block_until_ready(
        network_forward_xla(state_small, w1, b1, w2, b2))
    assert q_small.shape == (2, nb_action)
    assert jnp.allclose(q_small, ref_small, atol=1e-4, rtol=1e-4)

    # 2) awkward batch (B=1025) with a small tile: multi-step grid including a
    #    partial trailing block (exercises the cdiv/partial-block path).
    state_big = jax.random.normal(k_s2, (1025, input_size), jnp.float32)
    q_big = jax.block_until_ready(
        network_forward(state_big, w1, b1, w2, b2, tile_b=512))
    ref_big = jax.block_until_ready(
        network_forward_xla(state_big, w1, b1, w2, b2))
    assert q_big.shape == (1025, nb_action)
    assert jnp.allclose(q_big, ref_big, atol=1e-4, rtol=1e-4)

    # 3) optional bf16-compute path (loose tolerance; off by default).
    q_bf16 = jax.block_until_ready(
        network_forward(state_big, w1, b1, w2, b2, compute_dtype=jnp.bfloat16))
    assert q_bf16.shape == (1025, nb_action)
    assert jnp.allclose(q_bf16, ref_big, atol=3e-2, rtol=3e-2)

    print("KERNEL_OK")
</pallas_src>

<mosaic_0001>
module attributes {stable_mosaic.version = 11 : i64} {
  func.func @_mlp_kernel(%arg0: i32, %arg1: memref<8x5xf32, #tpu.memory_space<vmem>>, %arg2: memref<5x128xf32, #tpu.memory_space<vmem>>, %arg3: memref<1x128xf32, #tpu.memory_space<vmem>>, %arg4: memref<128x3xf32, #tpu.memory_space<vmem>>, %arg5: memref<1x3xf32, #tpu.memory_space<vmem>>, %arg6: memref<8x3xf32, #tpu.memory_space<vmem>>) attributes {dimension_semantics = [#tpu.dimension_semantics<parallel>], iteration_bounds = array<i64: 1>, scalar_prefetch = 0 : i64, scratch_operands = 0 : i64, tpu.core_type = #tpu.core_type<tc>, window_params = [{transform_indices = @transform_0, window_bounds = array<i64: 8, 5>}, {pipeline_mode = #tpu.pipeline_mode<synchronous>, transform_indices = @transform_1, window_bounds = array<i64: 5, 128>}, {pipeline_mode = #tpu.pipeline_mode<synchronous>, transform_indices = @transform_2, window_bounds = array<i64: 1, 128>}, {pipeline_mode = #tpu.pipeline_mode<synchronous>, transform_indices = @transform_3, window_bounds = array<i64: 128, 3>}, {pipeline_mode = #tpu.pipeline_mode<synchronous>, transform_indices = @transform_4, window_bounds = array<i64: 1, 3>}, {transform_indices = @transform_5, window_bounds = array<i64: 8, 3>}]} {
    %c0 = arith.constant 0 : index
    %c0_0 = arith.constant 0 : index
    %0 = vector.load %arg1[%c0, %c0_0] : memref<8x5xf32, #tpu.memory_space<vmem>>, vector<8x5xf32>
    %c0_1 = arith.constant 0 : index
    %c0_2 = arith.constant 0 : index
    %1 = vector.load %arg2[%c0_1, %c0_2] : memref<5x128xf32, #tpu.memory_space<vmem>>, vector<5x128xf32>
    %cst = arith.constant dense<0.000000e+00> : vector<8x128xf32>
    %2 = tpu.matmul %0, %1, %cst {dimension_numbers = #tpu.dot_dimension_numbers<[1], [0], [0], [1], [0, 0, 1, 1], [], []>} : vector<8x5xf32>, vector<5x128xf32>, vector<8x128xf32> -> vector<8x128xf32>
    %c0_3 = arith.constant 0 : index
    %c0_4 = arith.constant 0 : index
    %3 = vector.load %arg3[%c0_3, %c0_4] : memref<1x128xf32, #tpu.memory_space<vmem>>, vector<1x128xf32>
    %4 = vector.broadcast %3 : vector<1x128xf32> to vector<8x128xf32>
    %5 = arith.addf %2, %4 : vector<8x128xf32>
    %cst_5 = arith.constant 0.000000e+00 : f32
    %6 = vector.broadcast %cst_5 : f32 to vector<8x128xf32>
    %7 = arith.maximumf %5, %6 : vector<8x128xf32>
    %c0_6 = arith.constant 0 : index
    %c0_7 = arith.constant 0 : index
    %8 = vector.load %arg4[%c0_6, %c0_7] : memref<128x3xf32, #tpu.memory_space<vmem>>, vector<128x3xf32>
    %cst_8 = arith.constant dense<0.000000e+00> : vector<8x3xf32>
    %9 = tpu.matmul %7, %8, %cst_8 {dimension_numbers = #tpu.dot_dimension_numbers<[1], [0], [0], [1], [0, 0, 1, 1], [], []>} : vector<8x128xf32>, vector<128x3xf32>, vector<8x3xf32> -> vector<8x3xf32>
    %c0_9 = arith.constant 0 : index
    %c0_10 = arith.constant 0 : index
    %10 = vector.load %arg5[%c0_9, %c0_10] : memref<1x3xf32, #tpu.memory_space<vmem>>, vector<1x3xf32>
    %11 = vector.broadcast %10 : vector<1x3xf32> to vector<8x3xf32>
    %12 = arith.addf %9, %11 : vector<8x3xf32>
    %c0_11 = arith.constant 0 : index
    %c0_12 = arith.constant 0 : index
    %13 = vector.load %arg6[%c0_11, %c0_12] : memref<8x3xf32, #tpu.memory_space<vmem>>, vector<8x3xf32>
    tpu.vector_store %arg6[%c0_11, %c0_12], %12 {strides = array<i32>} : memref<8x3xf32, #tpu.memory_space<vmem>>, vector<8x3xf32>,
    return
  }
  func.func @transform_0(%arg0: i32) -> (i32, i32) {
    %c0_i32 = arith.constant 0 : i32
    %c0_i32_0 = arith.constant 0 : i32
    return %arg0, %c0_i32 : i32, i32
  }
  func.func @transform_1(%arg0: i32) -> (i32, i32) {
    %c0_i32 = arith.constant 0 : i32
    %c0_i32_0 = arith.constant 0 : i32
    %c0_i32_1 = arith.constant 0 : i32
    return %c0_i32, %c0_i32_0 : i32, i32
  }
  func.func @transform_2(%arg0: i32) -> (i32, i32) {
    %c0_i32 = arith.constant 0 : i32
    %c0_i32_0 = arith.constant 0 : i32
    %c0_i32_1 = arith.constant 0 : i32
    return %c0_i32, %c0_i32_0 : i32, i32
  }
  func.func @transform_3(%arg0: i32) -> (i32, i32) {
    %c0_i32 = arith.constant 0 : i32
    %c0_i32_0 = arith.constant 0 : i32
    %c0_i32_1 = arith.constant 0 : i32
    return %c0_i32, %c0_i32_0 : i32, i32
  }
  func.func @transform_4(%arg0: i32) -> (i32, i32) {
    %c0_i32 = arith.constant 0 : i32
    %c0_i32_0 = arith.constant 0 : i32
    %c0_i32_1 = arith.constant 0 : i32
    return %c0_i32, %c0_i32_0 : i32, i32
  }
  func.func @transform_5(%arg0: i32) -> (i32, i32) {
    %c0_i32 = arith.constant 0 : i32
    %c0_i32_0 = arith.constant 0 : i32
    return %arg0, %c0_i32 : i32, i32
  }
}

</mosaic_0001>

<bundles_post_ra>
// kernel: network_forward.1
= control target key start
LH: loop header
LB: loop body
LE: loop exit
PB: predicated region body
PF: predicated region fallthrough
CT: control target
= control target key end

     0   :  { %vm33_vm0 = vcmask 1044480   ;;  %vm29_vm1 = vcmask 39936   ;;  %v297_v0 = vmov 0.0   ;;  %vm298_vm2 = vmmov 0   ;;  %s393_s1 = inlined_call_operand.vmem [shape: f32[5,128], index: 1, kind: input, shape index: {}]   ;;  %s394_s0 = inlined_call_operand.vmem [shape: f32[8,5], index: 0, kind: input, shape index: {}]   ;;  %s395_s3 = inlined_call_operand.vmem [shape: f32[128,3], index: 3, kind: input, shape index: {}]   ;;  %s396_s2 = inlined_call_operand.vmem [shape: f32[1,128], index: 2, kind: input, shape index: {}]   ;;  %s397_s4 = inlined_call_operand.vmem [shape: f32[1,3], index: 4, kind: input, shape index: {}]   ;;  %s398_s5 = inlined_call_operand.vmem [shape: f32[8,3], index: 5, kind: output, shape index: {}]  }
   0x1   :  { %230 = vmatprep.subr.mxu0 %v297_v0  ;;  %v21_v1 = vld [vmem:[%s393_s1] sm:$0x1f]  ;;  %232 = vmatprep.mubr.msk.f32.mxu0 %vm298_vm2, %v297_v0  ;;  %v299_v4 = vmov 0.0|0.0   ;;  %v109_v5 = vld [vmem:[%s395_s3 + $0x8] sm:$0xff]  ;;  %v110_v6 = vld [vmem:[%s395_s3 + $0x10] sm:$0xff]  ;;  %vm201_vm3 = vcmask 23552  }
   0x2   :  { %v20_v2 = vld [vmem:[%s394_s0] sm:$0xff]  ;;  %231 = vmatpush3.msk.msra.mxu0 %vm33_vm0, %v21_v1  ;;  %270 = vmatprep.subr.bf16.mxu1 %v299_v4  ;;  %v111_v7 = vld [vmem:[%s395_s3 + $0x18] sm:$0xff]  ;;  %v113_v11 = vld [vmem:[%s395_s3 + $0x28] sm:$0xff] }
   0x3   :  { %v108_v3 = vld [vmem:[%s395_s3] sm:$0xff]  ;;  %233 = vmatmul.mubr.msk.f32.vlgmr.msra.gmra.mrb[0].mxu0 %vm29_vm1, %v20_v2  ;;  %267 = vmatprep.mubr.msk.f32.mxu1 %vm298_vm2, %v297_v0  ;;  %v274_v9 = vpack.c.bf16 %v111_v7, %v110_v6  ;;  %v114_v13 = vld [vmem:[%s395_s3 + $0x30] sm:$0xff]  ;;  %v115_v14 = vld [vmem:[%s395_s3 + $0x38] sm:$0xff] }
   0x4   :  { %v271_v8 = vpack.c.bf16 %v109_v5, %v108_v3  ;;  %v112_v10 = vld [vmem:[%s395_s3 + $0x20] sm:$0xff]  ;;  %v280_v15 = vpack.c.bf16 %v115_v14, %v114_v13  ;;  %v117_v17 = vld [vmem:[%s395_s3 + $0x48] sm:$0xff]  ;;  %v118_v19 = vld [vmem:[%s395_s3 + $0x50] sm:$0xff] }
   0x5   :  { %v277_v12 = vpack.c.bf16 %v113_v11, %v112_v10  ;;  %v116_v16 = vld [vmem:[%s395_s3 + $0x40] sm:$0xff]  ;;  %v119_v20 = vld [vmem:[%s395_s3 + $0x58] sm:$0xff]  ;;  %v121_v23 = vld [vmem:[%s395_s3 + $0x68] sm:$0xff] }
   0x6   :  { %272 = vmatpush3.bf16.msra.mxu1 %v271_v8  ;;  %v283_v18 = vpack.c.bf16 %v117_v17, %v116_v16  ;;  %v286_v21 = vpack.c.bf16 %v119_v20, %v118_v19  ;;  %v120_v22 = vld [vmem:[%s395_s3 + $0x60] sm:$0xff]  ;;  %v122_v25 = vld [vmem:[%s395_s3 + $0x70] sm:$0xff]  ;;  %v123_v26 = vld [vmem:[%s395_s3 + $0x78] sm:$0xff] }
   0x7   :  { %273 = vmatprep.subr.bf16.mxu1 %v299_v4  ;;  %v289_v24 = vpack.c.bf16 %v121_v23, %v120_v22  ;;  %v292_v27 = vpack.c.bf16 %v123_v26, %v122_v25  ;;  %v207_v28 = vld [vmem:[%s396_s2] ss:$0 sm:$0xff] }
   0x8   :  { %v210_v33 = vld [vmem:[%s397_s4] ss:$0 sm:$0xff] }
   0xa   :  { %275 = vmatpush3.bf16.msra.mxu1 %v274_v9 }
   0xb   :  { %276 = vmatprep.subr.bf16.mxu1 %v299_v4 }
   0xe   :  { %278 = vmatpush3.bf16.msra.mxu1 %v277_v12 }
   0xf   :  { %279 = vmatprep.subr.bf16.mxu1 %v299_v4 }
  0x12   :  { %281 = vmatpush3.bf16.msra.mxu1 %v280_v15 }
  0x13   :  { %282 = vmatprep.subr.bf16.mxu1 %v299_v4 }
  0x16   :  { %284 = vmatpush3.bf16.msra.mxu1 %v283_v18 }
  0x17   :  { %285 = vmatprep.subr.bf16.mxu1 %v299_v4 }
  0x1a   :  { %287 = vmatpush3.bf16.msra.mxu1 %v286_v21 }
  0x1b   :  { %288 = vmatprep.subr.bf16.mxu1 %v299_v4 }
  0x1e   :  { %290 = vmatpush3.bf16.msra.mxu1 %v289_v24 }
  0x1f   :  { %291 = vmatprep.subr.bf16.mxu1 %v299_v4 }
  0x22   :  { %293 = vmatpush3.bf16.msra.mxu1 %v292_v27 }
  0xd6   :  { %v103_v29 = vpop.f32.mrb[0].mxu0 }
  0xd7   :  { %v104_v30 = vadd.f32 %v207_v28, %v103_v29  ;;  %v234_v31 = vpop.f32.mrb[1].mxu0 }
  0xd9   :  { %v107_v32 = vmax.f32 %v104_v30, 0.0 }
  0xdb   :  { %268 = vmatmul.mubr.f32.vlgmr.msra.gmra.mrb[0].mxu1 %v107_v32 }
 0x1ae   :  { %v197_v34 = vpop.f32.mrb[0].mxu1 }
 0x1af   :  { %v198_v35 = vadd.f32 %v210_v33, %v197_v34  ;;  %v269_v36 = vpop.f32.mrb[1].mxu1 }
 0x1b1   :  { %202 = vst.msk [vmem:[%s398_s5] sm:$0xff] %vm201_vm3, %v198_v35 }

</bundles_post_ra>
